<compile_context>
chip_gen: v6e
topology: v6e:2x2x1
jax: 0.10.0
libtpu: 0.0.40
codegen_flags: <defaults>
</compile_context>

<pallas_src>
import jax
import jax.numpy as jnp
from jax.experimental import pallas as pl
from jax.experimental.pallas import tpu as pltpu


IMG_SIDE = 32
IMG_PIXELS = IMG_SIDE * IMG_SIDE               # = 1024 (flat row-major image)
PATCH_SIZE = 18
NUM_PATCHES = (IMG_SIDE // PATCH_SIZE) ** 2    # = 1
IN_FEATS = PATCH_SIZE * PATCH_SIZE             # = 324
HIDDEN = 16                                    # num_qubits
OUT_FEATS = 10
STREAM_ROWS = 20                               # image rows streamed (>= 18, 20*32 % 128 == 0)
STREAM_K = STREAM_ROWS * IMG_SIDE              # = 640, contracted K in the kernel
DEFAULT_TILE_M = 1024                          # sweep 512-2048 for very large B


def _round_up(n, m):
    return ((n + m - 1) // m) * m


def hybrid_kernel(x_ref, w1_ref, b1_ref, w2_ref, b2_ref, o_ref):
    # Fused patch-extract + fc1: w1 is zero outside the top-left 18x18 window,
    # so contracting the first 640 pixels equals contracting the patch exactly.
    # (TM, 640) @ (640, 16) + (1, 16)
    h = jnp.dot(x_ref[...], w1_ref[...], preferred_element_type=jnp.float32)
    h = jnp.maximum(h + b1_ref[...], 0.0)                       # ReLU
    # "quantum" layer: RX(theta) per qubit, most probable outcome -> +1 / -1
    q = jnp.where(jnp.cos(h) < 0.0, 1.0, -1.0).astype(jnp.float32)
    # fc2: (TM, 16) @ (16, 10) + (1, 10)
    logits = jnp.dot(q, w2_ref[...], preferred_element_type=jnp.float32)
    logits = logits + b2_ref[...]
    # log_softmax over dim=1
    m = jnp.max(logits, axis=-1, keepdims=True)
    s = logits - m
    lse = jnp.log(jnp.sum(jnp.exp(s), axis=-1, keepdims=True))
    o_ref[...] = s - lse


def pad_fc1_weight(w1):
    """Embed the (324, 16) patch weight into a zero-padded (640, 16) weight.

    Row-major over (row, col) of the first STREAM_ROWS (=20) image rows,
    matching columns 0..639 of the flat (B, 1024) image. Exact: padded
    rows/cols contribute 0.
    """
    w1_img = w1.reshape(PATCH_SIZE, PATCH_SIZE, HIDDEN)
    w1_pad = jnp.zeros((STREAM_ROWS, IMG_SIDE, HIDDEN), w1.dtype)
    w1_pad = w1_pad.at[:PATCH_SIZE, :PATCH_SIZE, :].set(w1_img)
    return w1_pad.reshape(STREAM_K, HIDDEN)


def hybrid_forward(x, params, *, tile_m=DEFAULT_TILE_M):
    """x: (B, 1, 32, 32) float32 (NCHW). Returns (B, 10) log-probabilities.

    params = (w1_padded (640,16), b1 (1,16), w2 (16,10), b2 (1,10)).
    """
    w1p, b1, w2, b2 = params
    B = x.shape[0]
    # Contiguous reshape (pure view, no HBM pass): (B,1,32,32) -> (B,1024).
    x_flat = x.reshape(B, IMG_PIXELS)

    # Batch tile: multiple of 8 sublanes; ensure >= 2 grid steps for large B so
    # both v7x TensorCores get work; clamp for tiny batches.
    tm = max(8, min(tile_m, _round_up(pl.cdiv(B, 2), 8)))
    grid = (pl.cdiv(B, tm),)

    # Streamed activation tiles (only the first 640 of 1024 pixels per row are
    # DMA'd); weights resident (same block every step).
    x_spec = pl.BlockSpec((tm, STREAM_K), lambda i: (i, 0))
    w1_spec = pl.BlockSpec(w1p.shape, lambda i: (0, 0))
    b1_spec = pl.BlockSpec(b1.shape, lambda i: (0, 0))
    w2_spec = pl.BlockSpec(w2.shape, lambda i: (0, 0))
    b2_spec = pl.BlockSpec(b2.shape, lambda i: (0, 0))
    out_spec = pl.BlockSpec((tm, OUT_FEATS), lambda i: (i, 0))

    return pl.pallas_call(
        hybrid_kernel,
        out_shape=jax.ShapeDtypeStruct((B, OUT_FEATS), jnp.float32),
        grid=grid,
        in_specs=[x_spec, w1_spec, b1_spec, w2_spec, b2_spec],
        out_specs=out_spec,
        compiler_params=pltpu.CompilerParams(
            dimension_semantics=("parallel",),  # shard batch tiles across TCs on v7x
        ),
    )(x_flat, w1p, b1, w2, b2)


def init_params(key):
    """Deterministic init mimicking nn.Linear default (uniform +-1/sqrt(fan_in)).

    Weights stored transposed: (in_features, out_features); fc1 weight is then
    zero-padded to the first 20 image rows (640 pixels) so the kernel consumes
    the flat image directly.
    """
    k1, k2, k3, k4 = jax.random.split(key, 4)
    bound1 = 1.0 / jnp.sqrt(IN_FEATS)
    w1 = jax.random.uniform(k1, (IN_FEATS, HIDDEN), jnp.float32, -bound1, bound1)
    b1 = jax.random.uniform(k2, (1, HIDDEN), jnp.float32, -bound1, bound1)
    fan2 = HIDDEN * NUM_PATCHES
    bound2 = 1.0 / jnp.sqrt(fan2)
    w2 = jax.random.uniform(k3, (fan2, OUT_FEATS), jnp.float32, -bound2, bound2)
    b2 = jax.random.uniform(k4, (1, OUT_FEATS), jnp.float32, -bound2, bound2)
    return pad_fc1_weight(w1), b1, w2, b2, w1   # last entry only for the reference check


def reference_forward(x, w1, b1, w2, b2):
    """Pure-JAX reference matching the PyTorch forward (ideal quantum layer)."""
    B = x.shape[0]
    patches = x.reshape(B, 1, IMG_SIDE, IMG_SIDE)[:, 0, :PATCH_SIZE, :PATCH_SIZE]
    patches = patches.reshape(B, IN_FEATS)
    h = jnp.maximum(patches @ w1 + b1, 0.0)
    q = jnp.where(jnp.cos(h) < 0.0, 1.0, -1.0).astype(jnp.float32)
    logits = q @ w2 + b2
    return jax.nn.log_softmax(logits, axis=-1)


if __name__ == "__main__":
    key = jax.random.PRNGKey(0)
    pkey, xkey = jax.random.split(key)
    w1p, b1, w2, b2, w1_dense = init_params(pkey)
    params = (w1p, b1, w2, b2)

    B = 2
    x = jax.random.normal(xkey, (B, 1, 32, 32), jnp.float32)

    out = jax.jit(hybrid_forward)(x, params)
    out = jax.block_until_ready(out)

    assert out.shape == (B, OUT_FEATS)
    assert out.dtype == jnp.float32
    # log_softmax rows should sum (in prob space) to ~1
    assert bool(jnp.allclose(jnp.exp(out).sum(axis=1), 1.0, atol=1e-4))
    # Match the unfused pure-JAX reference.
    ref = reference_forward(x, w1_dense, b1, w2, b2)
    assert bool(jnp.allclose(out, ref, rtol=1e-4, atol=1e-4))
    print("KERNEL_OK")
</pallas_src>

<mosaic_0001>
module attributes {stable_mosaic.version = 11 : i64} {
  func.func @hybrid_kernel(%arg0: i32, %arg1: memref<8x640xf32, #tpu.memory_space<vmem>>, %arg2: memref<640x16xf32, #tpu.memory_space<vmem>>, %arg3: memref<1x16xf32, #tpu.memory_space<vmem>>, %arg4: memref<16x10xf32, #tpu.memory_space<vmem>>, %arg5: memref<1x10xf32, #tpu.memory_space<vmem>>, %arg6: memref<8x10xf32, #tpu.memory_space<vmem>>) attributes {dimension_semantics = [#tpu.dimension_semantics<parallel>], iteration_bounds = array<i64: 1>, scalar_prefetch = 0 : i64, scratch_operands = 0 : i64, tpu.core_type = #tpu.core_type<tc>, window_params = [{transform_indices = @transform_0, window_bounds = array<i64: 8, 640>}, {pipeline_mode = #tpu.pipeline_mode<synchronous>, transform_indices = @transform_1, window_bounds = array<i64: 640, 16>}, {pipeline_mode = #tpu.pipeline_mode<synchronous>, transform_indices = @transform_2, window_bounds = array<i64: 1, 16>}, {pipeline_mode = #tpu.pipeline_mode<synchronous>, transform_indices = @transform_3, window_bounds = array<i64: 16, 10>}, {pipeline_mode = #tpu.pipeline_mode<synchronous>, transform_indices = @transform_4, window_bounds = array<i64: 1, 10>}, {transform_indices = @transform_5, window_bounds = array<i64: 8, 10>}]} {
    %c0 = arith.constant 0 : index
    %c0_0 = arith.constant 0 : index
    %0 = vector.load %arg1[%c0, %c0_0] : memref<8x640xf32, #tpu.memory_space<vmem>>, vector<8x640xf32>
    %c0_1 = arith.constant 0 : index
    %c0_2 = arith.constant 0 : index
    %1 = vector.load %arg2[%c0_1, %c0_2] : memref<640x16xf32, #tpu.memory_space<vmem>>, vector<640x16xf32>
    %cst = arith.constant dense<0.000000e+00> : vector<8x16xf32>
    %2 = tpu.matmul %0, %1, %cst {dimension_numbers = #tpu.dot_dimension_numbers<[1], [0], [0], [1], [0, 0, 1, 1], [], []>} : vector<8x640xf32>, vector<640x16xf32>, vector<8x16xf32> -> vector<8x16xf32>
    %c0_3 = arith.constant 0 : index
    %c0_4 = arith.constant 0 : index
    %3 = vector.load %arg3[%c0_3, %c0_4] : memref<1x16xf32, #tpu.memory_space<vmem>>, vector<1x16xf32>
    %4 = vector.broadcast %3 : vector<1x16xf32> to vector<8x16xf32>
    %5 = arith.addf %2, %4 : vector<8x16xf32>
    %cst_5 = arith.constant 0.000000e+00 : f32
    %6 = vector.broadcast %cst_5 : f32 to vector<8x16xf32>
    %7 = arith.maximumf %5, %6 : vector<8x16xf32>
    %8 = math.cos %7 : vector<8x16xf32>
    %cst_6 = arith.constant 0.000000e+00 : f32
    %9 = vector.broadcast %cst_6 : f32 to vector<8x16xf32>
    %10 = arith.cmpf olt, %8, %9 : vector<8x16xf32>
    %cst_7 = arith.constant 1.000000e+00 : f32
    %cst_8 = arith.constant -1.000000e+00 : f32
    %11 = vector.broadcast %cst_7 : f32 to vector<8x16xf32>
    %12 = vector.broadcast %cst_8 : f32 to vector<8x16xf32>
    %13 = arith.select %10, %11, %12 : vector<8x16xi1>, vector<8x16xf32>
    %c0_9 = arith.constant 0 : index
    %c0_10 = arith.constant 0 : index
    %14 = vector.load %arg4[%c0_9, %c0_10] : memref<16x10xf32, #tpu.memory_space<vmem>>, vector<16x10xf32>
    %cst_11 = arith.constant dense<0.000000e+00> : vector<8x10xf32>
    %15 = tpu.matmul %13, %14, %cst_11 {dimension_numbers = #tpu.dot_dimension_numbers<[1], [0], [0], [1], [0, 0, 1, 1], [], []>} : vector<8x16xf32>, vector<16x10xf32>, vector<8x10xf32> -> vector<8x10xf32>
    %c0_12 = arith.constant 0 : index
    %c0_13 = arith.constant 0 : index
    %16 = vector.load %arg5[%c0_12, %c0_13] : memref<1x10xf32, #tpu.memory_space<vmem>>, vector<1x10xf32>
    %17 = vector.broadcast %16 : vector<1x10xf32> to vector<8x10xf32>
    %18 = arith.addf %15, %17 : vector<8x10xf32>
    %cst_14 = arith.constant dense<0xFF800000> : vector<8xf32>
    %19 = vector.multi_reduction <maximumf>, %18, %cst_14 [1] : vector<8x10xf32> to vector<8xf32>
    %20 = vector.shape_cast %19 : vector<8xf32> to vector<8x1xf32>
    %21 = vector.broadcast %20 : vector<8x1xf32> to vector<8x10xf32>
    %22 = arith.subf %18, %21 : vector<8x10xf32>
    %23 = math.exp %22 : vector<8x10xf32>
    %cst_15 = arith.constant dense<0.000000e+00> : vector<8xf32>
    %24 = vector.multi_reduction <add>, %23, %cst_15 [1] : vector<8x10xf32> to vector<8xf32>
    %25 = vector.shape_cast %24 : vector<8xf32> to vector<8x1xf32>
    %26 = math.log %25 : vector<8x1xf32>
    %27 = vector.broadcast %26 : vector<8x1xf32> to vector<8x10xf32>
    %28 = arith.subf %22, %27 : vector<8x10xf32>
    %c0_16 = arith.constant 0 : index
    %c0_17 = arith.constant 0 : index
    %29 = vector.load %arg6[%c0_16, %c0_17] : memref<8x10xf32, #tpu.memory_space<vmem>>, vector<8x10xf32>
    tpu.vector_store %arg6[%c0_16, %c0_17], %28 {strides = array<i32>} : memref<8x10xf32, #tpu.memory_space<vmem>>, vector<8x10xf32>,
    return
  }
  func.func @transform_0(%arg0: i32) -> (i32, i32) {
    %c0_i32 = arith.constant 0 : i32
    %c0_i32_0 = arith.constant 0 : i32
    return %arg0, %c0_i32 : i32, i32
  }
  func.func @transform_1(%arg0: i32) -> (i32, i32) {
    %c0_i32 = arith.constant 0 : i32
    %c0_i32_0 = arith.constant 0 : i32
    %c0_i32_1 = arith.constant 0 : i32
    return %c0_i32, %c0_i32_0 : i32, i32
  }
  func.func @transform_2(%arg0: i32) -> (i32, i32) {
    %c0_i32 = arith.constant 0 : i32
    %c0_i32_0 = arith.constant 0 : i32
    %c0_i32_1 = arith.constant 0 : i32
    return %c0_i32, %c0_i32_0 : i32, i32
  }
  func.func @transform_3(%arg0: i32) -> (i32, i32) {
    %c0_i32 = arith.constant 0 : i32
    %c0_i32_0 = arith.constant 0 : i32
    %c0_i32_1 = arith.constant 0 : i32
    return %c0_i32, %c0_i32_0 : i32, i32
  }
  func.func @transform_4(%arg0: i32) -> (i32, i32) {
    %c0_i32 = arith.constant 0 : i32
    %c0_i32_0 = arith.constant 0 : i32
    %c0_i32_1 = arith.constant 0 : i32
    return %c0_i32, %c0_i32_0 : i32, i32
  }
  func.func @transform_5(%arg0: i32) -> (i32, i32) {
    %c0_i32 = arith.constant 0 : i32
    %c0_i32_0 = arith.constant 0 : i32
    return %arg0, %c0_i32 : i32, i32
  }
}

</mosaic_0001>

<bundles_post_ra>
// kernel: hybrid_forward.1
= control target key start
LH: loop header
LB: loop body
LE: loop exit
PB: predicated region body
PF: predicated region fallthrough
CT: control target
= control target key end

     0   :  { %10 = vsyncpa [#allocation4], 0  ;;  %v842_v29 = vmov 1983009808   ;;  %v162_v31 = vlaneseq  ;;  %v54_v54 = vld [vmem:[#allocation2 + $0xa] sm:$0xff]  ;;  %vm844_vm0 = vmmov 0   ;;  %s1198_s0 = inlined_call_operand.vmem [shape: f32[2,1024], index: 0, kind: input, shape index: {}]   ;;  %s1199_s1 = inlined_call_operand.vmem [shape: f32[640,16], index: 1, kind: input, shape index: {}]   ;;  %s1200_s2 = inlined_call_operand.vmem [shape: f32[1,16], index: 2, kind: input, shape index: {}]   ;;  %s1201_s3 = inlined_call_operand.vmem [shape: f32[16,10], index: 3, kind: input, shape index: {}]   ;;  %s1202_s4 = inlined_call_operand.vmem [shape: f32[1,10], index: 4, kind: input, shape index: {}]   ;;  %s1203_s5 = inlined_call_operand.hbm [shape: f32[2,10], index: 5, kind: output, shape index: {}]  }
   0x1   :  { %v91_v0 = vld [vmem:[%s1199_s1 + $0xf8] sm:$0xff]  ;;  %v90_v2 = vld [vmem:[%s1199_s1 + $0xf0] sm:$0xff]  ;;  %v89_v6 = vld [vmem:[%s1199_s1 + $0xe8] sm:$0xff]  ;;  %v160_v30 = vunpack.c.l.s4 %v842_v29  ;;  %vm538_vm14 = vcmask 130048  }
   0x2   :  { %v75_v1 = vld [vmem:[%s1199_s1 + $0x78] sm:$0xff]  ;;  %658 = vmatprep.subr.mxu0 %v91_v0  ;;  %v74_v4 = vld [vmem:[%s1199_s1 + $0x70] sm:$0xff]  ;;  %v73_v8 = vld [vmem:[%s1199_s1 + $0x68] sm:$0xff]  ;;  %v163_v41 = vshrl.u32 %v162_v31, 7 }
   0x3   :  { %v123_v3 = vld [vmem:[%s1199_s1 + $0x1f8] sm:$0xff]  ;;  %659 = vmatpush3.msra.mxu0 %v75_v1  ;;  %v122_v7 = vld [vmem:[%s1199_s1 + $0x1f0] sm:$0xff]  ;;  %v88_v10 = vld [vmem:[%s1199_s1 + $0xe0] sm:$0xff]  ;;  %v161_v40 = vunpack.c.0.s8 %v160_v30 }
   0x4   :  { %693 = vmatprep.subr.mxu1 %v123_v3  ;;  %v107_v5 = vld [vmem:[%s1199_s1 + $0x178] sm:$0xff]  ;;  %660 = vmatprep.subr.mxu0 %v90_v2  ;;  %v106_v9 = vld [vmem:[%s1199_s1 + $0x170] sm:$0xff]  ;;  %v121_v11 = vld [vmem:[%s1199_s1 + $0x1e8] sm:$0xff] }
   0x5   :  { %694 = vmatpush3.msra.mxu1 %v107_v5  ;;  %661 = vmatpush3.msra.mxu0 %v74_v4  ;;  %v105_v12 = vld [vmem:[%s1199_s1 + $0x168] sm:$0xff]  ;;  %v72_v13 = vld [vmem:[%s1199_s1 + $0x60] sm:$0xff]  ;;  %v87_v15 = vld [vmem:[%s1199_s1 + $0xd8] sm:$0xff]  ;;  %v1029_v53 = vsub.s32 %v161_v40, %v163_v41 }
   0x6   :  { %695 = vmatprep.subr.mxu1 %v122_v7  ;;  %662 = vmatprep.subr.mxu0 %v89_v6  ;;  %v120_v14 = vld [vmem:[%s1199_s1 + $0x1e0] sm:$0xff]  ;;  %v71_v17 = vld [vmem:[%s1199_s1 + $0x58] sm:$0xff]  ;;  %v86_v19 = vld [vmem:[%s1199_s1 + $0xd0] sm:$0xff] }
   0x7   :  { %696 = vmatpush3.msra.mxu1 %v106_v9  ;;  %663 = vmatpush3.msra.mxu0 %v73_v8  ;;  %v104_v16 = vld [vmem:[%s1199_s1 + $0x160] sm:$0xff]  ;;  %v119_v18 = vld [vmem:[%s1199_s1 + $0x1d8] sm:$0xff]  ;;  %v70_v21 = vld [vmem:[%s1199_s1 + $0x50] sm:$0xff] }
   0x8   :  { %697 = vmatprep.subr.mxu1 %v121_v11  ;;  %664 = vmatprep.subr.mxu0 %v88_v10  ;;  %v103_v20 = vld [vmem:[%s1199_s1 + $0x158] sm:$0xff]  ;;  %v118_v22 = vld [vmem:[%s1199_s1 + $0x1d0] sm:$0xff]  ;;  %v85_v23 = vld [vmem:[%s1199_s1 + $0xc8] sm:$0xff] }
   0x9   :  { %698 = vmatpush3.msra.mxu1 %v105_v12  ;;  %665 = vmatpush3.msra.mxu0 %v72_v13  ;;  %v102_v24 = vld [vmem:[%s1199_s1 + $0x150] sm:$0xff]  ;;  %v69_v25 = vld [vmem:[%s1199_s1 + $0x48] sm:$0xff]  ;;  %v84_v27 = vld [vmem:[%s1199_s1 + $0xc0] sm:$0xff] }
   0xa   :  { %699 = vmatprep.subr.mxu1 %v120_v14  ;;  %666 = vmatprep.subr.mxu0 %v87_v15  ;;  %v117_v26 = vld [vmem:[%s1199_s1 + $0x1c8] sm:$0xff]  ;;  %v68_v32 = vld [vmem:[%s1199_s1 + $0x40] sm:$0xff]  ;;  %v83_v34 = vld [vmem:[%s1199_s1 + $0xb8] sm:$0xff] }
   0xb   :  { %700 = vmatpush3.msra.mxu1 %v104_v16  ;;  %667 = vmatpush3.msra.mxu0 %v71_v17  ;;  %v101_v28 = vld [vmem:[%s1199_s1 + $0x148] sm:$0xff]  ;;  %v116_v33 = vld [vmem:[%s1199_s1 + $0x1c0] sm:$0xff]  ;;  %v67_v36 = vld [vmem:[%s1199_s1 + $0x38] sm:$0xff] }
   0xc   :  { %701 = vmatprep.subr.mxu1 %v119_v18  ;;  %668 = vmatprep.subr.mxu0 %v86_v19  ;;  %v100_v35 = vld [vmem:[%s1199_s1 + $0x140] sm:$0xff]  ;;  %v115_v37 = vld [vmem:[%s1199_s1 + $0x1b8] sm:$0xff]  ;;  %v82_v38 = vld [vmem:[%s1199_s1 + $0xb0] sm:$0xff] }
   0xd   :  { %702 = vmatpush3.msra.mxu1 %v103_v20  ;;  %669 = vmatpush3.msra.mxu0 %v70_v21  ;;  %v99_v39 = vld [vmem:[%s1199_s1 + $0x138] sm:$0xff]  ;;  %v66_v42 = vld [vmem:[%s1199_s1 + $0x30] sm:$0xff]  ;;  %v81_v44 = vld [vmem:[%s1199_s1 + $0xa8] sm:$0xff] }
   0xe   :  { %703 = vmatprep.subr.mxu1 %v118_v22  ;;  %670 = vmatprep.subr.mxu0 %v85_v23  ;;  %v114_v43 = vld [vmem:[%s1199_s1 + $0x1b0] sm:$0xff]  ;;  %v65_v45 = vld [vmem:[%s1199_s1 + $0x28] sm:$0xff]  ;;  %v80_v47 = vld [vmem:[%s1199_s1 + $0xa0] sm:$0xff]  ;;  %v843_v22 = vmov 0.0  }
   0xf   :  { %704 = vmatpush3.msra.mxu1 %v102_v24  ;;  %671 = vmatpush3.msra.mxu0 %v69_v25  ;;  %v98_v46 = vld [vmem:[%s1199_s1 + $0x130] sm:$0xff]  ;;  %v113_v48 = vld [vmem:[%s1199_s1 + $0x1a8] sm:$0xff]  ;;  %v64_v49 = vld [vmem:[%s1199_s1 + $0x20] sm:$0xff] }
  0x10   :  { %705 = vmatprep.subr.mxu1 %v117_v26  ;;  %672 = vmatprep.subr.mxu0 %v84_v27  ;;  %v97_v50 = vld [vmem:[%s1199_s1 + $0x128] sm:$0xff]  ;;  %v112_v51 = vld [vmem:[%s1199_s1 + $0x1a0] sm:$0xff]  ;;  %v79_v55 = vld [vmem:[%s1199_s1 + $0x98] sm:$0xff] }
  0x11   :  { %706 = vmatpush3.msra.mxu1 %v101_v28  ;;  %673 = vmatpush3.msra.mxu0 %v68_v32  ;;  %v27_v52 = vld [vmem:[%s1198_s0] sm:$0xff]  ;;  %v63_v59 = vld [vmem:[%s1199_s1 + $0x18] sm:$0xff]  ;;  %v78_v63 = vld [vmem:[%s1199_s1 + $0x90] sm:$0xff] }
  0x12   :  { %707 = vmatprep.subr.mxu1 %v116_v33  ;;  %674 = vmatprep.subr.mxu0 %v83_v34  ;;  %v96_v56 = vld [vmem:[%s1199_s1 + $0x120] sm:$0xff]  ;;  %v155_v57 = vcombine.low %v27_v52, %v54_v54  ;;  %v111_v60 = vld [vmem:[%s1199_s1 + $0x198] sm:$0xff]  ;;  %v156_v61 = vcombine.high %v27_v52, %v54_v54  ;;  %v62_v3 = vld [vmem:[%s1199_s1 + $0x10] sm:$0xff] }
  0x13   :  { %708 = vmatpush3.msra.mxu1 %v100_v35  ;;  %675 = vmatpush3.msra.mxu0 %v67_v36  ;;  %v807_v58 = vld [vmem:[#allocation2 + $0x14] ss:$10 sps:$4 sm:$0xff]   ;;  %v809_v62 = vld [vmem:[#allocation2 + $0x18] ss:$10 sps:$4 sm:$0xff]   ;;  %v77_v5 = vld [vmem:[%s1199_s1 + $0x88] sm:$0xff] }
  0x14   :  { %709 = vmatprep.subr.mxu1 %v115_v37  ;;  %676 = vmatprep.subr.mxu0 %v82_v38  ;;  %v95_v0 = vld [vmem:[%s1199_s1 + $0x118] sm:$0xff]  ;;  %v165_v1 = vrot.slane %v155_v57, %v1029_v53  ;;  %v179_v2 = vrot.slane %v807_v58, %v1029_v53  ;;  %v110_v4 = vld [vmem:[%s1199_s1 + $0x190] sm:$0xff]  ;;  %v61_v7 = vld [vmem:[%s1199_s1 + $0x8] sm:$0xff]  ;;  %v172_v10 = vrot.slane %v156_v61, %v1029_v53 }
  0x15   :  { %710 = vmatpush3.msra.mxu1 %v99_v39  ;;  %677 = vmatpush3.msra.mxu0 %v66_v42  ;;  %v94_v6 = vld [vmem:[%s1199_s1 + $0x110] sm:$0xff]  ;;  %v109_v8 = vld [vmem:[%s1199_s1 + $0x188] sm:$0xff]  ;;  %v186_v11 = vrot.slane %v809_v62, %v1029_v53  ;;  %v76_v12 = vld [vmem:[%s1199_s1 + $0x80] sm:$0xff] }
  0x16   :  { %711 = vmatprep.subr.mxu1 %v114_v43  ;;  %678 = vmatprep.subr.mxu0 %v81_v44  ;;  %v188_v9 = vcombine.high %v165_v1, %v179_v2  ;;  %v60_v13 = vld [vmem:[%s1199_s1] sm:$0xff]  ;;  %v93_v14 = vld [vmem:[%s1199_s1 + $0x108] sm:$0xff]  ;;  %v187_v15 = vcombine.low %v165_v1, %v179_v2  ;;  %v139_v20 = vld [vmem:[%s1199_s1 + $0x278] sm:$0xff] }
  0x17   :  { %712 = vmatpush3.msra.mxu1 %v98_v46  ;;  %679 = vmatpush3.msra.mxu0 %v65_v45  ;;  %v650_v16 = vld [vmem:[%s1198_s0 + $0x8] sm:$0x3]  ;;  %v108_v17 = vld [vmem:[%s1199_s1 + $0x180] sm:$0xff]  ;;  %v190_v19 = vcombine.high %v172_v10, %v186_v11  ;;  %v189_v21 = vcombine.low %v172_v10, %v186_v11  ;;  %v138_v23 = vld [vmem:[%s1199_s1 + $0x270] sm:$0xff] }
  0x18   :  { %713 = vmatprep.subr.mxu1 %v113_v48  ;;  %680 = vmatprep.subr.mxu0 %v80_v47  ;;  %40 = vst [vmem:[#allocation2 + $0x8] sm:$0x3] %v650_v16  ;;  %v92_v18 = vld [vmem:[%s1199_s1 + $0x100] sm:$0xff]  ;;  %v137_v24 = vld [vmem:[%s1199_s1 + $0x268] sm:$0xff]  ;;  %v135_v26 = vld [vmem:[%s1199_s1 + $0x258] sm:$0xff] }
  0x19   :  { %714 = vmatpush3.msra.mxu1 %v97_v50  ;;  %681 = vmatpush3.msra.mxu0 %v64_v49  ;;  %v136_v25 = vld [vmem:[%s1199_s1 + $0x260] sm:$0xff]  ;;  %v134_v27 = vld [vmem:[%s1199_s1 + $0x250] sm:$0xff]  ;;  %v133_v28 = vld [vmem:[%s1199_s1 + $0x248] sm:$0xff] }
  0x1a   :  { %715 = vmatprep.subr.mxu1 %v112_v51  ;;  %682 = vmatprep.subr.mxu0 %v79_v55  ;;  %v132_v29 = vld [vmem:[%s1199_s1 + $0x240] sm:$0xff]  ;;  %v131_v30 = vld [vmem:[%s1199_s1 + $0x238] sm:$0xff]  ;;  %v130_v31 = vld [vmem:[%s1199_s1 + $0x230] sm:$0xff] }
  0x1b   :  { %716 = vmatpush3.msra.mxu1 %v96_v56  ;;  %683 = vmatpush3.msra.mxu0 %v63_v59  ;;  %v129_v32 = vld [vmem:[%s1199_s1 + $0x228] sm:$0xff]  ;;  %v128_v33 = vld [vmem:[%s1199_s1 + $0x220] sm:$0xff]  ;;  %v127_v36 = vld [vmem:[%s1199_s1 + $0x218] sm:$0xff] }
  0x1c   :  { %717 = vmatprep.subr.mxu1 %v111_v60  ;;  %684 = vmatprep.subr.mxu0 %v78_v63  ;;  %v811_v35 = vld [vmem:[#allocation2 + $0x1c] ss:$10 sps:$4 sm:$0x33]   ;;  %v126_v37 = vld [vmem:[%s1199_s1 + $0x210] sm:$0xff]  ;;  %v125_v40 = vld [vmem:[%s1199_s1 + $0x208] sm:$0xff] }
  0x1d   :  { %718 = vmatpush3.msra.mxu1 %v95_v0  ;;  %685 = vmatpush3.msra.mxu0 %v62_v3  ;;  %v206_v39 = vrot.slane %v811_v35, %v1029_v53  ;;  %v124_v41 = vld [vmem:[%s1199_s1 + $0x200] sm:$0xff]  ;;  %v530_v43 = vld [vmem:[%s1201_s3 + $0x8] sm:$0xff] }
  0x1e   :  { %719 = vmatprep.subr.mxu1 %v110_v4  ;;  %686 = vmatprep.subr.mxu0 %v77_v5  ;;  %v529_v44 = vld [vmem:[%s1201_s3] sm:$0xff]  ;;  %v845_v4 = vmov 683565275  }
  0x1f   :  { %720 = vmatpush3.msra.mxu1 %v94_v6  ;;  %687 = vmatpush3.msra.mxu0 %v61_v7  ;;  %v810_v34 = vld [vmem:[#allocation2 + $0x8] ss:$10 sps:$4 sm:$0x33]   ;;  %v651_v49 = vld [vmem:[%s1200_s2] ss:$0 sm:$0xff] }
  0x20   :  { %721 = vmatprep.subr.mxu1 %v109_v8  ;;  %688 = vmatprep.subr.mxu0 %v76_v12  ;;  %v199_v38 = vrot.slane %v810_v34, %v1029_v53  ;;  %v846_v6 = vmov 2475754826   ;;  %v848_v12 = vmov 2102212464  }
  0x21   :  { %277 = vmatprep.mubr.f32.mxu0 %v188_v9  ;;  %689 = vmatpush3.msra.mxu0 %v60_v13  ;;  %v847_v9 = vmov 2131351028  }
  0x22   :  { %722 = vmatpush3.msra.mxu1 %v93_v14  ;;  %278 = vmatmul.mubr.f32.vlgmr.msra.gmra.mxu0 %v187_v15  ;;  %v207_v42 = vcombine.low %v199_v38, %v206_v39  ;;  %v849_v15 = vmov 920167782  }
  0x23   :  { %723 = vmatprep.subr.mxu1 %v108_v17  ;;  %748 = vmatprep.subr.mxu0 %v843_v22 }
  0x24   :  { %724 = vmatpush3.msra.mxu1 %v92_v18  ;;  %347 = vmatprep.mubr.f32.mxu1 %v190_v19  ;;  %v850_v18 = vmov 1326507024  }
  0x25   :  { %749 = vmatpush3.msra.mxu0 %v139_v20  ;;  %348 = vmatmul.mubr.f32.vlgmr.msra.gmra.mxu1 %v189_v21 }
  0x26   :  { %750 = vmatprep.subr.mxu0 %v843_v22  ;;  %780 = vmatprep.mubr.msk.f32.mxu0 %vm844_vm0, %v843_v22 }
  0x27   :  { %751 = vmatpush3.msra.mxu0 %v138_v23  ;;  %783 = vmatprep.subr.mxu1 %v843_v22 }
  0x28   :  { %752 = vmatprep.subr.mxu0 %v843_v22  ;;  %787 = vmatprep.mubr.msk.f32.mxu1 %vm844_vm0, %v843_v22  ;;  %vm612_vm0 = vcmask 80896  }
  0x29   :  { %753 = vmatpush3.msra.mxu0 %v137_v24  ;;  %784 = vmatpush3.msra.mxu1 %v530_v43 }
  0x2a   :  { %754 = vmatprep.subr.mxu0 %v843_v22  ;;  %785 = vmatprep.subr.mxu1 %v843_v22 }
  0x2b   :  { %755 = vmatpush3.msra.mxu0 %v136_v25  ;;  %786 = vmatpush3.msra.mxu1 %v529_v44 }
  0x2c   :  { %756 = vmatprep.subr.mxu0 %v843_v22 }
  0x2d   :  { %757 = vmatpush3.msra.mxu0 %v135_v26 }
  0x2e   :  { %758 = vmatprep.subr.mxu0 %v843_v22 }
  0x2f   :  { %759 = vmatpush3.msra.mxu0 %v134_v27 }
  0x30   :  { %760 = vmatprep.subr.mxu0 %v843_v22 }
  0x31   :  { %761 = vmatpush3.msra.mxu0 %v133_v28 }
  0x32   :  { %762 = vmatprep.subr.mxu0 %v843_v22 }
  0x33   :  { %763 = vmatpush3.msra.mxu0 %v132_v29 }
  0x34   :  { %764 = vmatprep.subr.mxu0 %v843_v22 }
  0x35   :  { %765 = vmatpush3.msra.mxu0 %v131_v30 }
  0x36   :  { %766 = vmatprep.subr.mxu0 %v843_v22 }
  0x37   :  { %767 = vmatpush3.msra.mxu0 %v130_v31 }
  0x38   :  { %768 = vmatprep.subr.mxu0 %v843_v22 }
  0x39   :  { %769 = vmatpush3.msra.mxu0 %v129_v32 }
  0x3a   :  { %770 = vmatprep.subr.mxu0 %v843_v22 }
  0x3b   :  { %771 = vmatpush3.msra.mxu0 %v128_v33 }
  0x3c   :  { %772 = vmatprep.subr.mxu0 %v843_v22 }
  0x3d   :  { %773 = vmatpush3.msra.mxu0 %v127_v36 }
  0x3e   :  { %774 = vmatprep.subr.mxu0 %v843_v22 }
  0x3f   :  { %775 = vmatpush3.msra.mxu0 %v126_v37 }
  0x40   :  { %776 = vmatprep.subr.mxu0 %v843_v22 }
  0x41   :  { %777 = vmatpush3.msra.mxu0 %v125_v40 }
  0x42   :  { %778 = vmatprep.subr.mxu0 %v843_v22 }
  0x43   :  { %779 = vmatpush3.msra.mxu0 %v124_v41 }
  0x44   :  { %781 = vmatmul.mubr.f32.vlgmr.msra.gmra.mxu0 %v207_v42 }
  0xe2   :  { %v690_v45 = vpop.f32.mrf.mxu0 }
  0xe4   :  { %v691_v46 = vpop.f32.mrf.mxu0 }
  0xe5   :  { %v725_v47 = vpop.f32.mrf.mxu1  ;;  %v692_v48 = vadd.f32 %v691_v46, %v690_v45 }
  0xe7   :  { %v726_v50 = vpop.f32.mrf.mxu1  ;;  %v280_v51 = vadd.f32 %v692_v48, %v651_v49 }
  0xe8   :  { %v727_v52 = vadd.f32 %v726_v50, %v725_v47 }
  0xea   :  { %v350_v53 = vadd.f32 %v727_v52, %v280_v51 }
 0x104   :  { %v419_v54 = vpop.f32.mrf.mxu0 }
 0x105   :  { %v420_v55 = vadd.f32 %v419_v54, %v350_v53 }
 0x106   :  { %v782_v56 = vpop.f32.mrf.mxu0 }
 0x107   :  { %v1168_v57 = vmax.f32 %v420_v55, 0.0 }
 0x109   :  { %v427_v58 = vand.u32 2139095040, %v1168_v57  ;;  %v424_v62 = vand.u32 2147483647, %v1168_v57  ;;  %vm426_vm8 = vcmp.lt.s32.totalorder %v1168_v57, 0  ;;  %vm516_vm13 = vweird.f32 %v1168_v57 }
 0x10b   :  { %v428_v59 = vshrl.u32 %v427_v58, 23  ;;  %v431_v1 = vand.u32 8388607, %v424_v62  ;;  %vm425_vm9 = vcmp.le.f32.partialorder %v424_v62, 0.7853982 }
 0x10d   :  { %v652_v60 = vadd.s32 4294967169, %v428_v59  ;;  %v432_v20 = vor.u32 8388608, %v431_v1 }
 0x10f   :  { %v434_v61 = vadd.s32 1, %v652_v60  ;;  %v472_v34 = vshll.u32 %v432_v20, 8 }
 0x111   :  { %vm435_vm1 = vcmp.gt.s32.totalorder %v434_v61, 0 }
 0x112   :  { %v436_v63 = vsel %vm435_vm1, %v434_v61, 0 }
 0x113   :  { %v438_v0 = vand.u32 31, %v436_v63  ;;  %v437_v3 = vshrl.u32 %v436_v63, 5 }
 0x115   :  { %v439_v2 = vsub.s32 32, %v438_v0  ;;  %v441_v5 = vshll.u32 %v845_v4, %v438_v0  ;;  %v444_v7 = vshll.u32 %v846_v6, %v438_v0  ;;  %v447_v11 = vshll.u32 %v847_v9, %v438_v0 }
 0x116   :  { %v450_v14 = vshll.u32 %v848_v12, %v438_v0  ;;  %v453_v17 = vshll.u32 %v849_v15, %v438_v0  ;;  %vm456_vm2 = vcmp.lt.s32.totalorder %v437_v3, 1  ;;  %vm459_vm3 = vcmp.lt.s32.totalorder %v437_v3, 4 }
 0x117   :  { %v442_v8 = vshrl.u32 %v846_v6, %v439_v2  ;;  %v445_v10 = vshrl.u32 %v847_v9, %v439_v2  ;;  %v448_v13 = vshrl.u32 %v848_v12, %v439_v2  ;;  %v451_v16 = vshrl.u32 %v849_v15, %v439_v2 }
 0x118   :  { %v454_v19 = vshrl.u32 %v850_v18, %v439_v2  ;;  %v440_v29 = vshrl.u32 %v845_v4, %v439_v2  ;;  %vm458_vm4 = vcmp.lt.s32.totalorder %v437_v3, 3  ;;  %vm457_vm5 = vcmp.lt.s32.totalorder %v437_v3, 2 }
 0x119   :  { %v443_v21 = vor.u32 %v442_v8, %v441_v5  ;;  %v446_v22 = vor.u32 %v445_v10, %v444_v7  ;;  %v449_v23 = vor.u32 %v448_v13, %v447_v11  ;;  %v452_v24 = vor.u32 %v451_v16, %v450_v14 }
 0x11a   :  { %v455_v25 = vor.u32 %v454_v19, %v453_v17 }
 0x11b   :  { %v461_v26 = vsel %vm459_vm3, %v449_v23, 2102212464  ;;  %v464_v27 = vsel %vm456_vm2, %v443_v21, %v446_v22  ;;  %v468_v28 = vsel %vm456_vm2, %v446_v22, %v449_v23  ;;  %v465_v30 = vsel %vm459_vm3, %v452_v24, 920167782 }
 0x11c   :  { %v469_v31 = vsel %vm459_vm3, %v455_v25, 1326507024  ;;  %v466_v32 = vsel %vm458_vm4, %v449_v23, %v465_v30  ;;  %v460_v35 = vsel %vm456_vm2, %v440_v29, %v443_v21  ;;  %v462_v36 = vsel %vm458_vm4, %v446_v22, %v461_v26  ;;  %v656_v23 = vld [vmem:[%s1202_s4] ss:$0 sm:$0xff] }
 0x11d   :  { %v470_v33 = vsel %vm458_vm4, %v452_v24, %v469_v31  ;;  %v467_v37 = vsel %vm457_vm5, %v464_v27, %v466_v32  ;;  %v463_v43 = vsel %vm457_vm5, %v460_v35, %v462_v36  ;;  %v851_v21 = vmov -1.0  }
 0x11e   :  { %v471_v38 = vsel %vm457_vm5, %v468_v28, %v470_v33  ;;  %v1177_v41 = vmul.u32.u64.low %v472_v34, %v467_v37  ;;  %v1178_v42 = vmul.u32.u64.high %v472_v34, %v467_v37, %v1177_v41  ;;  %v479_v45 = vmul.u32 %v472_v34, %v463_v43 }
 0x11f   :  { %v1174_v39 = vmul.u32.u64.low %v472_v34, %v471_v38  ;;  %v1175_v40 = vmul.u32.u64.high %v472_v34, %v471_v38, %v1174_v39 }
 0x120   :  { %v482_v44 = vadd.s32 1, %v1178_v42 }
 0x121   :  { %vm481_vm6 = vc.u32 %v1175_v40, %v1177_v41  ;;  %v480_v58 = vadd.s32 %v1177_v41, %v1175_v40 }
 0x122   :  { %v483_v46 = vsel %vm481_vm6, %v482_v44, %v1178_v42 }
 0x123   :  { %v484_v47 = vadd.s32 %v483_v46, %v479_v45 }
 0x125   :  { %v485_v48 = vadd.s32 536870912, %v484_v47 }
 0x127   :  { %v486_v49 = vshrl.u32 %v485_v48, 30 }
 0x129   :  { %v487_v50 = vshll.u32 %v486_v49, 30  ;;  %v510_v10 = vsub.s32 4, %v486_v49 }
 0x12b   :  { %v488_v51 = vsub.s32 %v484_v47, %v487_v50  ;;  %v511_v11 = vsel %vm426_vm8, %v510_v10, %v486_v49 }
 0x12c   :  { %v513_v12 = vsel %vm425_vm9, 0, %v511_v11 }
 0x12d   :  { %v490_v52 = vsub.s32 0, %v488_v51  ;;  %v517_v13 = vand.u32 3, %v513_v12 }
 0x12f   :  { %v653_v53 = vmin.u32 %v490_v52, %v488_v51  ;;  %vm522_vm10 = vcmp.eq.s32.totalorder %v517_v13, 2  ;;  %vm519_vm11 = vcmp.eq.s32.totalorder %v517_v13, 0  ;;  %vm518_vm12 = vcmp.lt.s32.totalorder %v517_v13, 2 }
 0x131   :  { %v492_v54 = vclz %v653_v53 }
 0x133   :  { %v654_v55 = vadd.s32 4294967294, %v492_v54 }
 0x135   :  { %vm655_vm7 = vcmp.lt.s32.totalorder %v654_v55, 0 }
 0x136   :  { %v495_v56 = vsel %vm655_vm7, 0, %v654_v55 }
 0x137   :  { %v496_v59 = vsub.s32 32, %v495_v56  ;;  %v500_v60 = vsub.s32 4294967266, %v495_v56  ;;  %v497_v61 = vshll.u32 %v488_v51, %v495_v56 }
 0x139   :  { %v498_v63 = vshrl.u32 %v480_v58, %v496_v59  ;;  %v501_v0 = vadd.s32 127, %v500_v60 }
 0x13b   :  { %v499_v1 = vor.u32 %v498_v63, %v497_v61  ;;  %v502_v2 = vshll.u32 %v501_v0, 23 }
 0x13d   :  { %v503_v3 = vor.u32 4788187, %v502_v2  ;;  %v506_v5 = vcvt.s32.f32 %v499_v1 }
 0x13f   :  { %v504_v4 = vand.u32 2147483647, %v503_v3 }
 0x141   :  { %v507_v6 = vmul.f32 %v506_v5, %v504_v4 }
 0x143   :  { %v508_v7 = vxor.u32 2147483648, %v507_v6 }
 0x145   :  { %v509_v8 = vsel %vm426_vm8, %v508_v7, %v507_v6 }
 0x146   :  { %v512_v9 = vsel %vm425_vm9, %v1168_v57, %v509_v8 }
 0x147   :  { %812 = vcosq.f32 %v512_v9 }
 0x148   :  { %814 = vsinq.f32 %v512_v9 }
 0x154   :  { %v813_v14 = vpop.eup %812 }
 0x155   :  { %v815_v15 = vpop.eup %814  ;;  %v523_v16 = vxor.u32 2147483648, %v813_v14 }
 0x156   :  { %v520_v17 = vxor.u32 2147483648, %v815_v15 }
 0x157   :  { %v524_v18 = vsel %vm522_vm10, %v523_v16, %v815_v15 }
 0x158   :  { %v521_v19 = vsel %vm519_vm11, %v813_v14, %v520_v17 }
 0x159   :  { %v525_v62 = vsel %vm518_vm12, %v521_v19, %v524_v18 }
 0x15a   :  { %v526_v20 = vsel %vm516_vm13, nan, %v525_v62 }
 0x15b   :  { %vm527_vm15 = vcmp.lt.f32.partialorder %v526_v20, 0.0 }
 0x15c   :  { %v528_v22 = vsel %vm527_vm15, 1.0, %v851_v21 }
 0x15d   :  { %788 = vmatmul.mubr.msk.f32.vlgmr.msra.gmra.mxu1 %vm538_vm14, %v528_v22 }
 0x21d   :  { %v608_v24 = vpop.f32.mrf.mxu1 }
 0x21e   :  { %v609_v25 = vadd.f32 %v656_v23, %v608_v24 }
 0x21f   :  { %v789_v26 = vpop.f32.mrf.mxu1 }
 0x220   :  { %v613_v27 = vsel %vm612_vm0, %v609_v25, -inf }
 0x221   :  { %614 = vmax.xlane.f32.xlu0 %v613_v27 }
 0x2aa   :  { %v615_v28 = vpop.xlane.xlu0 %614 }
 0x2ab   :  { %v616_v57 = vsub.f32 %v609_v25, %v615_v28 }
 0x2ad   :  { %v617_v29 = vmul.f32 1.442695, %v616_v57 }
 0x2af   :  { %816 = vpow2.f32 %v617_v29 }
 0x2bc   :  { %v817_v30 = vpop.eup %816 }
 0x2bd   :  { %v619_v31 = vsel %vm612_vm0, %v817_v30, 0.0 }
 0x2be   :  { %620 = vadd.xlane.f32.xlu0 %v619_v31 }
 0x347   :  { %v621_v32 = vpop.xlane.xlu0 %620 }
 0x348   :  { %818 = vlog2.f32 %v621_v32 }
 0x355   :  { %v819_v33 = vpop.eup %818 }
 0x356   :  { %v623_v34 = vmul.f32 0.6931472, %v819_v33 }
 0x358   :  { %v624_v35 = vsub.f32 %v616_v57, %v623_v34 }
 0x35a   :  { %625 = vst.msk [vmem:[#allocation3] sm:$0xff] %vm612_vm0, %v624_v35 }
 0x35b   :  { %630 = vsyncadd [#allocation4], 96  ;;  %s852_s4 = smov [#allocation3]  }
 0x35c   :  { %s631_s10 = sshll.u32 %s852_s4, 4  ;;  %s632_s10 = int_to_ptr.vmem [resolvable:$true] %s631_s10 }
 0x35d   :  { %s820_s11 = scalar_lea.vmem %s632_s10, 32  ;;  %s824_s12 = scalar_lea.vmem %s632_s10, 128 }
 0x35e   :  { %p821_p0 = scmp.ne.s32.totalorder %s632_s10, %s820_s11  ;;  %p825_p1 = scmp.lt.s32.totalorder %s632_s10, %s632_s10 }
 0x35f   :  { %p826_p2 = scmp.lt.s32.totalorder %s824_s12, %s820_s11 }
 0x361   :  { %p827_p3 = por %p826_p2, %p825_p1 }
 0x363   :  { %p828_p4 = pnand %p827_p3, %p821_p0 }
 0x365   :  { %831 = shalt.err (!%p828_p4)
}
 0x366   :  { %s853_s13 = smov 32   ;;  %s854_s14 = smov 2  }
 0x367   :  { %637 = dma.vmem_to_hbm [thread:$0]  %s632_s10, 32, %s1203_s5, [#allocation4], %s853_s13, %s853_s13, %s854_s14  }
 0x368   :  { %840 = dma.done.wait [#allocation4], 128  }
 0x369   :  { %841 = vsyncadd [#allocation4], 4294967168 }
 0x36a   :  { %641 = vsyncpa [#allocation4], 1 }

</bundles_post_ra>
